<compile_context>
chip_gen: v7x
topology: tpu7x:2x2x1
jax: 0.10.0
libtpu: 0.0.40
codegen_flags: <defaults>
</compile_context>

<pallas_src>
import jax
import jax.numpy as jnp
from jax.experimental import pallas as pl
from jax.experimental.pallas import tpu as pltpu


# ----------------------------- Pallas kernel --------------------------------
def _stid_kernel(x_ts_ref, static_ref, adj_ref, w_ts_ref, b_ts_ref,
                 gcn_w_ref, w_reg_ref, b_reg_ref, out_ref):
    # x_ts_ref   : (TB, N, F)          per-tile flattened history
    # static_ref : (TB, N, C_static)   merged [node | tid | diw] embeddings
    # adj_ref    : (N, N)              precomputed D^-1/2 (A+I) D^-1/2
    # w_ts_ref   : (F, E)              pre-transposed 1x1-conv weight
    # gcn_w_ref  : (L, H, H)           pre-transposed GCN weights
    # w_reg_ref  : (H, O)              pre-transposed regression weight
    # out_ref    : (TB, N, O)
    TB, N, F = x_ts_ref.shape
    num_layer, H, _ = gcn_w_ref.shape
    O = w_reg_ref.shape[-1]

    # --- time-series embedding (1x1 conv == matmul); batches folded into rows ---
    x = x_ts_ref[...].reshape(TB * N, F)
    ts_emb = jnp.dot(x, w_ts_ref[...],
                     preferred_element_type=jnp.float32) + b_ts_ref[...]

    # --- hidden = [ts_emb | node_emb | tid_emb | diw_emb] on the feature axis ---
    static = static_ref[...].reshape(TB * N, static_ref.shape[-1])
    hidden = jnp.concatenate([ts_emb, static], axis=-1)            # [TB*N, H]

    # node-major layout so the shared adjacency multiplies all TB batches at once
    hidden = jnp.transpose(hidden.reshape(TB, N, H), (1, 0, 2)).reshape(N * TB, H)

    adj_norm = adj_ref[...]
    # --- GCN encoder: out = A_norm @ (hidden @ W.T); hidden = relu(out + hidden)
    for layer in range(num_layer):
        w = gcn_w_ref[layer]                                        # [H, H] (pre-transposed)
        lin = jnp.dot(hidden, w, preferred_element_type=jnp.float32)        # [N*TB, H]
        agg = jnp.dot(adj_norm, lin.reshape(N, TB * H),
                      preferred_element_type=jnp.float32).reshape(N * TB, H)
        hidden = jnp.maximum(agg + hidden, 0.0)
        # TODO(synk): dropout(p=0.15) skipped (eval-mode identity).

    # --- regression head (1x1 conv == matmul) ---
    pred = jnp.dot(hidden, w_reg_ref[...],
                   preferred_element_type=jnp.float32) + b_reg_ref[...]     # [N*TB, O]
    out_ref[...] = jnp.transpose(pred.reshape(N, TB, O), (1, 0, 2))         # [TB, N, O]


def _pick_batch_tile(B):
    """Largest batch tile that still leaves >=2 grid steps (v7x has 2 TCs)."""
    if B <= 1:
        return B
    for tb in range(B // 2, 0, -1):
        if B % tb == 0:
            return tb
    return 1


# ------------------------------ Wrapper --------------------------------------
def stid_forward(history_data, params, *, input_dim, num_layer):
    """history_data: [B, L, N, C] float32. Returns [B, output_len, N, 1]."""
    B, L, N, C = history_data.shape

    # time-series input: [B,L,N,Din] -> [B,N,L,Din] -> [B,N,L*Din]
    input_data = history_data[..., :input_dim]
    x_ts = jnp.transpose(input_data, (0, 2, 1, 3)).reshape(B, N, L * input_dim)

    # embedding gathers (glue, not the hot path), merged into one static slab
    tid_idx = history_data[:, -1, :, 1].astype(jnp.int32)          # [B, N]
    diw_idx = history_data[:, -1, :, 2].astype(jnp.int32)          # [B, N]
    tid_emb = params["time_in_day_emb"][tid_idx]                   # [B, N, Ttid]
    diw_emb = params["day_in_week_emb"][diw_idx]                   # [B, N, Tdiw]
    node_emb = params["node_emb"]                                  # [N, node_dim]
    static = jnp.concatenate(
        [jnp.broadcast_to(node_emb[None], (B, N, node_emb.shape[-1])),
         tid_emb, diw_emb], axis=-1)                               # [B, N, C_static]

    # batch-invariant GCN normalization, computed once (hoisted out of kernel)
    adj = params["adj"] + jnp.eye(N, dtype=jnp.float32)
    d_inv_sqrt = jnp.sum(adj, axis=1) ** -0.5
    adj_norm = d_inv_sqrt[:, None] * adj * d_inv_sqrt[None, :]     # [N, N]

    # pre-transposed weights (no in-kernel transposes)
    w_ts_t = params["w_ts"].T                                      # [F, E]
    gcn_w_t = jnp.transpose(params["gcn_w"], (0, 2, 1))            # [L, H, H]
    w_reg_t = params["w_reg"].T                                    # [H, O]
    b_ts, b_reg = params["b_ts"], params["b_reg"]                  # [1,E], [1,O]

    F_ts = x_ts.shape[-1]
    C_static = static.shape[-1]
    E = w_ts_t.shape[-1]
    L_gcn = gcn_w_t.shape[0]
    H = gcn_w_t.shape[-1]
    out_len = w_reg_t.shape[-1]

    TB = _pick_batch_tile(B)

    pred_bno = pl.pallas_call(
        _stid_kernel,
        out_shape=jax.ShapeDtypeStruct((B, N, out_len), jnp.float32),
        grid_spec=pltpu.PrefetchScalarGridSpec(
            num_scalar_prefetch=0,
            grid=(B // TB,),
            in_specs=[
                pl.BlockSpec((TB, N, F_ts), lambda b: (b, 0, 0)),
                pl.BlockSpec((TB, N, C_static), lambda b: (b, 0, 0)),
                pl.BlockSpec((N, N), lambda b: (0, 0)),
                pl.BlockSpec((F_ts, E), lambda b: (0, 0)),
                pl.BlockSpec(b_ts.shape, lambda b: (0, 0)),
                pl.BlockSpec((L_gcn, H, H), lambda b: (0, 0, 0)),
                pl.BlockSpec((H, out_len), lambda b: (0, 0)),
                pl.BlockSpec(b_reg.shape, lambda b: (0, 0)),
            ],
            out_specs=pl.BlockSpec((TB, N, out_len), lambda b: (b, 0, 0)),
        ),
        compiler_params=pltpu.CompilerParams(
            dimension_semantics=("parallel",)),
    )(x_ts, static, adj_norm, w_ts_t, b_ts, gcn_w_t, w_reg_t, b_reg)

    # [B, N, out_len] -> [B, out_len, N, 1]  (PyTorch NCHW conv output)
    return jnp.transpose(pred_bno, (0, 2, 1))[..., None]


# --------------------------- Pure-JAX reference -------------------------------
def stid_reference(history_data, params, *, input_dim, num_layer):
    B, L, N, C = history_data.shape
    input_data = history_data[..., :input_dim]
    x_ts = jnp.transpose(input_data, (0, 2, 1, 3)).reshape(B, N, L * input_dim)
    tid = params["time_in_day_emb"][history_data[:, -1, :, 1].astype(jnp.int32)]
    diw = params["day_in_week_emb"][history_data[:, -1, :, 2].astype(jnp.int32)]
    ts_emb = x_ts @ params["w_ts"].T + params["b_ts"]
    node = jnp.broadcast_to(params["node_emb"][None], (B, N, params["node_emb"].shape[-1]))
    hidden = jnp.concatenate([ts_emb, node, tid, diw], axis=-1)

    adj = params["adj"] + jnp.eye(N, dtype=jnp.float32)
    d = jnp.sum(adj, axis=1) ** -0.5
    adj_norm = d[:, None] * adj * d[None, :]
    for l in range(num_layer):
        lin = hidden @ params["gcn_w"][l].T
        agg = jnp.einsum("ij,bjh->bih", adj_norm, lin)
        hidden = jnp.maximum(agg + hidden, 0.0)
    pred = hidden @ params["w_reg"].T + params["b_reg"]
    return jnp.transpose(pred, (0, 2, 1))[..., None]


# ----------------------------------- Main -------------------------------------
if __name__ == "__main__":
    # Small, module-consistent shapes
    B, L, N = 2, 8, 16
    input_dim = 3                      # history channels used (incl. tid/diw)
    embed_dim = 32
    node_dim = 16
    temp_dim_tid = 8
    temp_dim_diw = 8
    output_len = 8
    num_layer = 2
    time_of_day_size = 288
    day_of_week_size = 7
    hidden_dim = embed_dim + node_dim + temp_dim_tid + temp_dim_diw  # 64
    F_ts = L * input_dim

    key = jax.random.PRNGKey(0)
    ks = jax.random.split(key, 12)

    # History data: channel 0 = value, channel 1 = time-of-day idx, channel 2 = day-of-week idx
    vals = jax.random.normal(ks[0], (B, L, N, 1), dtype=jnp.float32)
    tod = jax.random.randint(ks[1], (B, L, N, 1), 0, time_of_day_size).astype(jnp.float32)
    dow = jax.random.randint(ks[2], (B, L, N, 1), 0, day_of_week_size).astype(jnp.float32)
    history_data = jnp.concatenate([vals, tod, dow], axis=-1)       # [B, L, N, 3]

    # Deterministic synthetic adjacency (in place of get_edge_data_loader()).
    adj_rand = jax.random.uniform(ks[3], (N, N))
    adj = ((adj_rand + adj_rand.T) > 1.2).astype(jnp.float32)
    adj = adj * (1.0 - jnp.eye(N, dtype=jnp.float32))

    def xavier(k, shape):
        fan_in, fan_out = shape[-1], shape[-2] if len(shape) > 1 else shape[-1]
        scale = (6.0 / (fan_in + fan_out)) ** 0.5
        return jax.random.uniform(k, shape, jnp.float32, -scale, scale)

    params = {
        "node_emb": xavier(ks[4], (N, node_dim)),
        "time_in_day_emb": xavier(ks[5], (time_of_day_size, temp_dim_tid)),
        "day_in_week_emb": xavier(ks[6], (day_of_week_size, temp_dim_diw)),
        "w_ts": xavier(ks[7], (embed_dim, F_ts)),
        "b_ts": jnp.zeros((1, embed_dim), jnp.float32) + 0.01,
        "gcn_w": xavier(ks[8], (num_layer, hidden_dim, hidden_dim)),
        "w_reg": xavier(ks[9], (output_len, hidden_dim)),
        "b_reg": jnp.zeros((1, output_len), jnp.float32) + 0.02,
        "adj": adj,
    }

    out = stid_forward(history_data, params, input_dim=input_dim, num_layer=num_layer)
    out = jax.block_until_ready(out)

    ref = stid_reference(history_data, params, input_dim=input_dim, num_layer=num_layer)
    assert out.shape == (B, output_len, N, 1), out.shape
    assert jnp.allclose(out, ref, atol=1e-4, rtol=1e-4), "mismatch vs JAX reference"

    print("KERNEL_OK")
</pallas_src>

<mosaic_0001>
module attributes {stable_mosaic.version = 11 : i64} {
  func.func @_stid_kernel(%arg0: i32, %arg1: memref<1x16x24xf32, #tpu.memory_space<vmem>>, %arg2: memref<1x16x32xf32, #tpu.memory_space<vmem>>, %arg3: memref<16x16xf32, #tpu.memory_space<vmem>>, %arg4: memref<24x32xf32, #tpu.memory_space<vmem>>, %arg5: memref<1x32xf32, #tpu.memory_space<vmem>>, %arg6: memref<2x64x64xf32, #tpu.memory_space<vmem>>, %arg7: memref<64x8xf32, #tpu.memory_space<vmem>>, %arg8: memref<1x8xf32, #tpu.memory_space<vmem>>, %arg9: memref<1x16x8xf32, #tpu.memory_space<vmem>>) attributes {dimension_semantics = [#tpu.dimension_semantics<parallel>], iteration_bounds = array<i64: 2>, scalar_prefetch = 0 : i64, scratch_operands = 0 : i64, tpu.core_type = #tpu.core_type<tc>, window_params = [{transform_indices = @transform_0, window_bounds = array<i64: 1, 16, 24>}, {transform_indices = @transform_1, window_bounds = array<i64: 1, 16, 32>}, {pipeline_mode = #tpu.pipeline_mode<synchronous>, transform_indices = @transform_2, window_bounds = array<i64: 16, 16>}, {pipeline_mode = #tpu.pipeline_mode<synchronous>, transform_indices = @transform_3, window_bounds = array<i64: 24, 32>}, {pipeline_mode = #tpu.pipeline_mode<synchronous>, transform_indices = @transform_4, window_bounds = array<i64: 1, 32>}, {pipeline_mode = #tpu.pipeline_mode<synchronous>, transform_indices = @transform_5, window_bounds = array<i64: 2, 64, 64>}, {pipeline_mode = #tpu.pipeline_mode<synchronous>, transform_indices = @transform_6, window_bounds = array<i64: 64, 8>}, {pipeline_mode = #tpu.pipeline_mode<synchronous>, transform_indices = @transform_7, window_bounds = array<i64: 1, 8>}, {transform_indices = @transform_8, window_bounds = array<i64: 1, 16, 8>}]} {
    %c0 = arith.constant 0 : index
    %c0_0 = arith.constant 0 : index
    %c0_1 = arith.constant 0 : index
    %0 = vector.load %arg1[%c0, %c0_0, %c0_1] : memref<1x16x24xf32, #tpu.memory_space<vmem>>, vector<1x16x24xf32>
    %1 = vector.shape_cast %0 : vector<1x16x24xf32> to vector<16x24xf32>
    %c0_2 = arith.constant 0 : index
    %c0_3 = arith.constant 0 : index
    %2 = vector.load %arg4[%c0_2, %c0_3] : memref<24x32xf32, #tpu.memory_space<vmem>>, vector<24x32xf32>
    %cst = arith.constant dense<0.000000e+00> : vector<16x32xf32>
    %3 = tpu.matmul %1, %2, %cst {dimension_numbers = #tpu.dot_dimension_numbers<[1], [0], [0], [1], [0, 0, 1, 1], [], []>} : vector<16x24xf32>, vector<24x32xf32>, vector<16x32xf32> -> vector<16x32xf32>
    %c0_4 = arith.constant 0 : index
    %c0_5 = arith.constant 0 : index
    %4 = vector.load %arg5[%c0_4, %c0_5] : memref<1x32xf32, #tpu.memory_space<vmem>>, vector<1x32xf32>
    %5 = vector.broadcast %4 : vector<1x32xf32> to vector<16x32xf32>
    %6 = arith.addf %3, %5 : vector<16x32xf32>
    %c0_6 = arith.constant 0 : index
    %c0_7 = arith.constant 0 : index
    %c0_8 = arith.constant 0 : index
    %7 = vector.load %arg2[%c0_6, %c0_7, %c0_8] : memref<1x16x32xf32, #tpu.memory_space<vmem>>, vector<1x16x32xf32>
    %8 = vector.shape_cast %7 : vector<1x16x32xf32> to vector<16x32xf32>
    %9 = tpu.concatenate %6, %8 in 1 : vector<16x32xf32>, vector<16x32xf32> -> vector<16x64xf32>
    %10 = vector.shape_cast %9 : vector<16x64xf32> to vector<1x16x64xf32>
    %11 = tpu.transpose %10, [1, 0, 2] : vector<1x16x64xf32> -> vector<16x1x64xf32>
    %12 = vector.shape_cast %11 : vector<16x1x64xf32> to vector<16x64xf32>
    %c0_9 = arith.constant 0 : index
    %c0_10 = arith.constant 0 : index
    %13 = vector.load %arg3[%c0_9, %c0_10] : memref<16x16xf32, #tpu.memory_space<vmem>>, vector<16x16xf32>
    %c0_11 = arith.constant 0 : index
    %c0_12 = arith.constant 0 : index
    %c0_13 = arith.constant 0 : index
    %14 = vector.load %arg6[%c0_11, %c0_12, %c0_13] : memref<2x64x64xf32, #tpu.memory_space<vmem>>, vector<1x64x64xf32>
    %15 = vector.shape_cast %14 : vector<1x64x64xf32> to vector<64x64xf32>
    %cst_14 = arith.constant dense<0.000000e+00> : vector<16x64xf32>
    %16 = tpu.matmul %12, %15, %cst_14 {dimension_numbers = #tpu.dot_dimension_numbers<[1], [0], [0], [1], [0, 0, 1, 1], [], []>} : vector<16x64xf32>, vector<64x64xf32>, vector<16x64xf32> -> vector<16x64xf32>
    %cst_15 = arith.constant dense<0.000000e+00> : vector<16x64xf32>
    %17 = tpu.matmul %13, %16, %cst_15 {dimension_numbers = #tpu.dot_dimension_numbers<[1], [0], [0], [1], [0, 0, 1, 1], [], []>} : vector<16x16xf32>, vector<16x64xf32>, vector<16x64xf32> -> vector<16x64xf32>
    %18 = arith.addf %17, %12 : vector<16x64xf32>
    %cst_16 = arith.constant 0.000000e+00 : f32
    %19 = vector.broadcast %cst_16 : f32 to vector<16x64xf32>
    %20 = arith.maximumf %18, %19 : vector<16x64xf32>
    %c1 = arith.constant 1 : index
    %c0_17 = arith.constant 0 : index
    %c0_18 = arith.constant 0 : index
    %21 = vector.load %arg6[%c1, %c0_17, %c0_18] : memref<2x64x64xf32, #tpu.memory_space<vmem>>, vector<1x64x64xf32>
    %22 = vector.shape_cast %21 : vector<1x64x64xf32> to vector<64x64xf32>
    %cst_19 = arith.constant dense<0.000000e+00> : vector<16x64xf32>
    %23 = tpu.matmul %20, %22, %cst_19 {dimension_numbers = #tpu.dot_dimension_numbers<[1], [0], [0], [1], [0, 0, 1, 1], [], []>} : vector<16x64xf32>, vector<64x64xf32>, vector<16x64xf32> -> vector<16x64xf32>
    %cst_20 = arith.constant dense<0.000000e+00> : vector<16x64xf32>
    %24 = tpu.matmul %13, %23, %cst_20 {dimension_numbers = #tpu.dot_dimension_numbers<[1], [0], [0], [1], [0, 0, 1, 1], [], []>} : vector<16x16xf32>, vector<16x64xf32>, vector<16x64xf32> -> vector<16x64xf32>
    %25 = arith.addf %24, %20 : vector<16x64xf32>
    %cst_21 = arith.constant 0.000000e+00 : f32
    %26 = vector.broadcast %cst_21 : f32 to vector<16x64xf32>
    %27 = arith.maximumf %25, %26 : vector<16x64xf32>
    %c0_22 = arith.constant 0 : index
    %c0_23 = arith.constant 0 : index
    %28 = vector.load %arg7[%c0_22, %c0_23] : memref<64x8xf32, #tpu.memory_space<vmem>>, vector<64x8xf32>
    %cst_24 = arith.constant dense<0.000000e+00> : vector<16x8xf32>
    %29 = tpu.matmul %27, %28, %cst_24 {dimension_numbers = #tpu.dot_dimension_numbers<[1], [0], [0], [1], [0, 0, 1, 1], [], []>} : vector<16x64xf32>, vector<64x8xf32>, vector<16x8xf32> -> vector<16x8xf32>
    %c0_25 = arith.constant 0 : index
    %c0_26 = arith.constant 0 : index
    %30 = vector.load %arg8[%c0_25, %c0_26] : memref<1x8xf32, #tpu.memory_space<vmem>>, vector<1x8xf32>
    %31 = vector.broadcast %30 : vector<1x8xf32> to vector<16x8xf32>
    %32 = arith.addf %29, %31 : vector<16x8xf32>
    %33 = vector.shape_cast %32 : vector<16x8xf32> to vector<16x1x8xf32>
    %34 = tpu.transpose %33, [1, 0, 2] : vector<16x1x8xf32> -> vector<1x16x8xf32>
    %c0_27 = arith.constant 0 : index
    %c0_28 = arith.constant 0 : index
    %c0_29 = arith.constant 0 : index
    %35 = vector.load %arg9[%c0_27, %c0_28, %c0_29] : memref<1x16x8xf32, #tpu.memory_space<vmem>>, vector<1x16x8xf32>
    tpu.vector_store %arg9[%c0_27, %c0_28, %c0_29], %34 {strides = array<i32>} : memref<1x16x8xf32, #tpu.memory_space<vmem>>, vector<1x16x8xf32>,
    return
  }
  func.func @transform_0(%arg0: i32) -> (i32, i32, i32) {
    %c0_i32 = arith.constant 0 : i32
    %c0_i32_0 = arith.constant 0 : i32
    %c0_i32_1 = arith.constant 0 : i32
    return %arg0, %c0_i32, %c0_i32_0 : i32, i32, i32
  }
  func.func @transform_1(%arg0: i32) -> (i32, i32, i32) {
    %c0_i32 = arith.constant 0 : i32
    %c0_i32_0 = arith.constant 0 : i32
    %c0_i32_1 = arith.constant 0 : i32
    return %arg0, %c0_i32, %c0_i32_0 : i32, i32, i32
  }
  func.func @transform_2(%arg0: i32) -> (i32, i32) {
    %c0_i32 = arith.constant 0 : i32
    %c0_i32_0 = arith.constant 0 : i32
    %c0_i32_1 = arith.constant 0 : i32
    return %c0_i32, %c0_i32_0 : i32, i32
  }
  func.func @transform_3(%arg0: i32) -> (i32, i32) {
    %c0_i32 = arith.constant 0 : i32
    %c0_i32_0 = arith.constant 0 : i32
    %c0_i32_1 = arith.constant 0 : i32
    return %c0_i32, %c0_i32_0 : i32, i32
  }
  func.func @transform_4(%arg0: i32) -> (i32, i32) {
    %c0_i32 = arith.constant 0 : i32
    %c0_i32_0 = arith.constant 0 : i32
    %c0_i32_1 = arith.constant 0 : i32
    return %c0_i32, %c0_i32_0 : i32, i32
  }
  func.func @transform_5(%arg0: i32) -> (i32, i32, i32) {
    %c0_i32 = arith.constant 0 : i32
    %c0_i32_0 = arith.constant 0 : i32
    %c0_i32_1 = arith.constant 0 : i32
    %c0_i32_2 = arith.constant 0 : i32
    return %c0_i32, %c0_i32_0, %c0_i32_1 : i32, i32, i32
  }
  func.func @transform_6(%arg0: i32) -> (i32, i32) {
    %c0_i32 = arith.constant 0 : i32
    %c0_i32_0 = arith.constant 0 : i32
    %c0_i32_1 = arith.constant 0 : i32
    return %c0_i32, %c0_i32_0 : i32, i32
  }
  func.func @transform_7(%arg0: i32) -> (i32, i32) {
    %c0_i32 = arith.constant 0 : i32
    %c0_i32_0 = arith.constant 0 : i32
    %c0_i32_1 = arith.constant 0 : i32
    return %c0_i32, %c0_i32_0 : i32, i32
  }
  func.func @transform_8(%arg0: i32) -> (i32, i32, i32) {
    %c0_i32 = arith.constant 0 : i32
    %c0_i32_0 = arith.constant 0 : i32
    %c0_i32_1 = arith.constant 0 : i32
    return %arg0, %c0_i32, %c0_i32_0 : i32, i32, i32
  }
}

</mosaic_0001>

<bundles_post_ra>
// kernel: tpu_custom_call.1
= control target key start
LH: loop header
LB: loop body
LE: loop exit
PB: predicated region body
PF: predicated region fallthrough
CT: control target
= control target key end

     0   :  { %13 = vsyncpa [#allocation3], 0  ;;  %s1984_s0 = inlined_call_operand.vmem [shape: f32[2,16,24], index: 0, kind: input, shape index: {}]   ;;  %s1985_s1 = inlined_call_operand.vmem [shape: f32[2,16,32], index: 1, kind: input, shape index: {}]   ;;  %s1986_s2 = inlined_call_operand.hbm [shape: f32[16,16], index: 2, kind: input, shape index: {}]   ;;  %s1987_s3 = inlined_call_operand.hbm [shape: f32[24,32], index: 3, kind: input, shape index: {}]   ;;  %s1988_s4 = inlined_call_operand.vmem [shape: f32[1,32], index: 4, kind: input, shape index: {}]   ;;  %s1989_s5 = inlined_call_operand.hbm [shape: f32[2,64,64], index: 5, kind: input, shape index: {}]   ;;  %s1990_s6 = inlined_call_operand.vmem [shape: f32[64,8], index: 6, kind: input, shape index: {}]   ;;  %s1991_s7 = inlined_call_operand.vmem [shape: f32[1,8], index: 7, kind: input, shape index: {}]   ;;  %s1992_s8 = inlined_call_operand.vmem [shape: f32[2,16,8], index: 8, kind: output, shape index: {}]  }
   0x1   :  { %14 = vsyncpa [#allocation5], 0  ;;  %s1790_s27 = smov 0  }
   0x2 LB: > { %s1796_s28 = sadd.s32 4294967295, %s1733_s27   ;;  %p1368_p0 = scmp.ge.s32.totalorder %s1733_s27, 1  ;;  %s1733_s27 = sphi %s1790_s27, %s20_s27  }
   0x3   : > { %p229_p1 = scmp.lt.s32.totalorder %s1733_s27, 3  ;;  %p1993_p2 = scmp.eq.s32.totalorder %s1796_s28, 0 }
   0x4   : > { %s1735_s30 = smov [#allocation4]   ;;  %s1736_s10 = smov [#allocation2]  }
   0x5   : > { %p1801_p3 = pnand %p1368_p0, %p229_p1  ;;  %s254_s9 = sshll.u32 %s1735_s30, 4  ;;  %s255_s9 = int_to_ptr.vmem [resolvable:$true] %s254_s9 }
   0x6   : > { %s241_s11 = sshll.u32 %s1736_s10, 4  ;;  %s1737_s13 = smov [#allocation6]   ;;  %s1813_s11 = int_to_ptr.vmem [resolvable:$true] %s241_s11 }
   0x7   : > { %s1995_s29 = scalar_select %p1801_p3, 1, 0 }
   0x8   : > { %p1601_p4 = pneg %p1801_p3  ;;  %s270_s14 = sshll.u32 %s1737_s13, 4  ;;  %s1815_s14 = int_to_ptr.vmem [resolvable:$true] %s270_s14 }
   0x9   : > { %s1635_s17 = scalar_lea.hbm %s1987_s3, 384 }
   0xa   : > { %p1809_p5 = pnand %p1993_p2, %p1601_p4  ;;  %p1636_p6 = scmp.ne.s32.totalorder %s1987_s3, %s1635_s17 }
   0xb   : > { %p1642_p10 = scmp.lt.u32.totalorder %s1635_s17, %s1987_s3 }
   0xc   : > { %p1825_p7 = pneg %p1809_p5 }
   0xe   : > { %p1638_p8 = pnand %p1825_p7, %p1636_p6 }
  0x10   : > { %p1639_p9 = pneg %p1638_p8 }
  0x12   : > { %p1644_p11 = pnand %p1642_p10, %p1639_p9 }
  0x14   : > { %1647 = shalt.err (!%p1644_p11)
}
  0x15   : > { %s1648_s23 = scalar_lea.vmem %s255_s9, 384  ;;  %p1656_p1 = scmp.lt.s32.totalorder %s255_s9, %s255_s9 }
  0x16   : > { %p1649_p12 = scmp.ne.s32.totalorder %s255_s9, %s1648_s23  ;;  %p1657_p4 = scmp.lt.s32.totalorder %s1648_s23, %s1648_s23 }
  0x18   : > { %p1651_p13 = pnand %p1649_p12, %p1825_p7  ;;  %p1658_p2 = por %p1657_p4, %p1656_p1 }
  0x1a   : > { %p1652_p0 = pneg %p1651_p13 }
  0x1c   : > { %p1659_p3 = pnand %p1658_p2, %p1652_p0 }
  0x1e   : > { %1662 = shalt.err (!%p1659_p3)
}
  0x1f   : > { %s1738_s24 = smov 128   ;;  %s1739_s25 = smov 8  }
  0x20   : > { %1607 = dma.hbm_to_vmem [thread:$0]  (!%p1809_p5), %s1987_s3, 384, %s255_s9, [#allocation5], %s1738_s24, %s1738_s24, %s1739_s25  }
  0x21   : > { %s1663_s15 = scalar_lea.hbm %s1986_s2, 256 }
  0x22   : > { %p1664_p2 = scmp.ne.s32.totalorder %s1986_s2, %s1663_s15  ;;  %p1670_p8 = scmp.lt.u32.totalorder %s1663_s15, %s1986_s2 }
  0x24   : > { %p1666_p3 = pnand %p1664_p2, %p1825_p7 }
  0x26   : > { %p1667_p6 = pneg %p1666_p3 }
  0x28   : > { %p1672_p9 = pnand %p1670_p8, %p1667_p6 }
  0x2a   : > { %1675 = shalt.err (!%p1672_p9)
}
  0x2b   : > { %s1676_s9 = scalar_lea.vmem %s1813_s11, 256  ;;  %p1684_p13 = scmp.lt.s32.totalorder %s1813_s11, %s1813_s11 }
  0x2c   : > { %p1677_p10 = scmp.ne.s32.totalorder %s1813_s11, %s1676_s9  ;;  %p1685_p0 = scmp.lt.s32.totalorder %s1676_s9, %s1676_s9 }
  0x2e   : > { %p1679_p11 = pnand %p1677_p10, %p1825_p7  ;;  %p1686_p1 = por %p1685_p0, %p1684_p13 }
  0x30   : > { %p1680_p12 = pneg %p1679_p11 }
  0x32   : > { %p1687_p4 = pnand %p1686_p1, %p1680_p12 }
  0x34   : > { %1690 = shalt.err (!%p1687_p4)
}
  0x35   : > { %1604 = dma.hbm_to_vmem [thread:$0]  (!%p1809_p5), %s1986_s2, 256, %s1813_s11, [#allocation3], %s1738_s24, %s1738_s24, %s1739_s25  }
  0x36   : > { %s1691_s30 = scalar_lea.hbm %s1989_s5, 2048 }
  0x37   : > { %p1692_p2 = scmp.ne.s32.totalorder %s1989_s5, %s1691_s30  ;;  %p1698_p8 = scmp.lt.u32.totalorder %s1691_s30, %s1989_s5 }
  0x39   : > { %p1694_p3 = pnand %p1692_p2, %p1825_p7 }
  0x3b   : > { %p1695_p6 = pneg %p1694_p3 }
  0x3d   : > { %p1700_p9 = pnand %p1698_p8, %p1695_p6 }
  0x3f   : > { %1703 = shalt.err (!%p1700_p9)
}
  0x40   : > { %s1704_s11 = scalar_lea.vmem %s1815_s14, 2048  ;;  %p1712_p13 = scmp.lt.s32.totalorder %s1815_s14, %s1815_s14 }
  0x41   : > { %p1705_p10 = scmp.ne.s32.totalorder %s1815_s14, %s1704_s11  ;;  %p1713_p0 = scmp.lt.s32.totalorder %s1704_s11, %s1704_s11 }
  0x43   : > { %p1707_p11 = pnand %p1705_p10, %p1825_p7  ;;  %p1714_p1 = por %p1713_p0, %p1712_p13 }
  0x45   : > { %p1708_p12 = pneg %p1707_p11 }
  0x47   : > { %p1715_p4 = pnand %p1714_p1, %p1708_p12 }
  0x49   : > { %1718 = shalt.err (!%p1715_p4)
}
  0x4a   : > { %1610 = dma.hbm_to_vmem [thread:$0]  (!%p1809_p5), %s1989_s5, 2048, %s1815_s14, [#allocation5], %s1738_s24, %s1738_s24, %s1739_s25  }
  0x4b   : > { %p1998_p2 = scmp.ne.s32.totalorder %s1995_s29, 0 }
  0x4c   : > { %p1999_p7 = scmp.eq.s32.totalorder (!%p1998_p2), %s1796_s28, 0 }
  0x4d   : > { %308 = sbr.rel (%p1998_p2) target bundleno = 1439 (0x59f), region = 52 }
  0x54   : > { %1724 = dma.done.wait (%p1999_p7), [#allocation3], 256   ;;  %p2000_p3 = pmov %p1999_p7 }
  0x56   : > { %1726 = vsyncadd (%p2000_p3), [#allocation3], 4294967040  ;;  %p2001_p6 = pmov %p2000_p3 }
  0x57   : > { %p2002_p8 = pmov %p2000_p3 }
  0x58   : > { %1728 = dma.done.wait (%p2001_p6), [#allocation5], 2432  }
  0x59   : > { %1730 = vsyncadd (%p2002_p8), [#allocation5], 4294964864  ;;  %p355_p9 = scmp.lt.s32.totalorder %s1796_s28, 1  ;;  %vm382_vm0 = vcmask 195584   ;;  %v372_v0 = vld [vmem:[#allocation4] sm:$0xff]  ;;  %v373_v1 = vld [vmem:[#allocation4 + $0x8] sm:$0xff]  ;;  %v481_v22 = vlaneseq }
  0x5a   : > { %v1529_v2 = vpack.c.bf16 %v373_v1, %v372_v0  ;;  %v374_v5 = vld [vmem:[#allocation4 + $0x10] sm:$0xff]  ;;  %v577_v8 = vld [vmem:[#allocation6] sm:$0xff]  ;;  %v578_v9 = vld [vmem:[#allocation6 + $0x8] sm:$0xff]  ;;  %v1741_v20 = vmov 1983009808   ;;  %vm474_vm1 = vcmask 261120  }
  0x5b   : > { %s2004_s28 = smov (!%p355_p9, %s1796_s28), 1  ;;  %v1533_v10 = vpack.c.bf16 %v578_v9, %v577_v8  ;;  %v579_v11 = vld [vmem:[#allocation6 + $0x10] sm:$0xff]  ;;  %v580_v12 = vld [vmem:[#allocation6 + $0x18] sm:$0xff]  ;;  %v581_v14 = vld [vmem:[#allocation6 + $0x20] sm:$0xff]  ;;  %v479_v21 = vunpack.c.l.s4 %v1741_v20  ;;  %v1742_v24 = vmov 1934713408  }
  0x5c   : > { %s1908_s12 = sshll.u32 %s2004_s28, 4  ;;  %s1740_s28 = smov 32   ;;  %1530 = vmatprep.subr.bf16.mxu0 %v1529_v2  ;;  %v1537_v13 = vpack.c.bf16 %v580_v12, %v579_v11  ;;  %v582_v15 = vld [vmem:[#allocation6 + $0x28] sm:$0xff]  ;;  %v583_v17 = vld [vmem:[#allocation6 + $0x30] sm:$0xff]  ;;  %v584_v18 = vld [vmem:[#allocation6 + $0x38] sm:$0xff]  ;;  %v494_v25 = vunpack.c.l.s4 %v1742_v24  ;;  %v1920_v27 = vshrl.u32 %v481_v22, 7 }
  0x5d   : > { %s359_s20 = scalar_lea.vmem %s1984_s0, %s1908_s12  ;;  %s364_s19 = scalar_lea.vmem %s1985_s1, %s1908_s12  ;;  %1532 = vmatpush3.bf16.msra.mxu0 %v1529_v2  ;;  %1534 = vmatprep.subr.bf16.mxu1 %v1533_v10  ;;  %v1541_v16 = vpack.c.bf16 %v582_v15, %v581_v14  ;;  %v1545_v19 = vpack.c.bf16 %v584_v18, %v583_v17  ;;  %v480_v26 = vunpack.c.0.s8 %v479_v21  ;;  %v1383_v28 = vld [vmem:[%s1988_s4] ss:$0 sm:$0xff]  ;;  %vm602_vm2 = vcmask 1041409  }
  0x5e   : > { %v370_v3 = vld [vmem:[%s359_s20] sm:$0xff]  ;;  %v465_v6 = vld [vmem:[%s364_s19 + $0x8] sm:$0xff]  ;;  %1453 = vmatprep.subr.mxu0 %v374_v5  ;;  %1536 = vmatpush3.bf16.msra.mxu1 %v1533_v10  ;;  %v495_v29 = vunpack.c.0.s8 %v494_v25  ;;  %v1743_v39 = vmov 0.0   ;;  %vm605_vm3 = vcmask 1042434   ;;  %vm608_vm4 = vcmask 1043459   ;;  %s369_s22 = scalar_lea.vmem %s1992_s8, %s1908_s12 }
  0x5f   : > { %v464_v4 = vld [vmem:[%s364_s19] sm:$0xff]  ;;  %1455 = vmatprep.mubr.msk.f32.mxu0 %vm382_vm0, %v370_v3  ;;  %v371_v7 = vld [vmem:[%s359_s20 + $0x8] sm:$0xff]  ;;  %1538 = vmatprep.subr.bf16.mxu1 %v1537_v13  ;;  %v483_v31 = vsub.s32 %v480_v26, %v1920_v27  ;;  %vm611_vm5 = vcmask 1044484   ;;  %vm614_vm6 = vcmask 1045509   ;;  %vm617_vm7 = vcmask 1046534  }
  0x60   : > { %468 = vrot.lane.b32.xlu0 %v464_v4, %s1740_s28  ;;  %v498_v36 = vsub.s32 %v495_v29, %v1920_v27  ;;  %vm620_vm8 = vcmask 1047559   ;;  %vm636_vm9 = vcmask 523264   ;;  %vm718_vm10 = vcmask 130048  }
  0x61   : > { %1454 = vmatpush3.msra.mxu0 %v374_v5  ;;  %vm1265_vm11 = vcmask 64512  }
  0x62   : > { %1456 = vmatmul.mubr.msk.f32.vlgmr.msra.gmra.mrb[0].mxu0 %vm382_vm0, %v371_v7  ;;  %1540 = vmatpush3.bf16.msra.mxu1 %v1537_v13 }
  0x63   : > { %1542 = vmatprep.subr.bf16.mxu1 %v1541_v16 }
  0x64   : > { %470 = vrot.lane.b32.xlu0 %v465_v6, %s1740_s28 }
  0x66   : > { %1544 = vmatpush3.bf16.msra.mxu1 %v1541_v16 }
  0x67   : > { %1546 = vmatprep.subr.bf16.mxu1 %v1545_v19 }
  0x6a   : > { %1548 = vmatpush3.bf16.msra.mxu1 %v1545_v19 }
  0xd2   : > { %v469_v23 = vpop.permute.xlu0 %468 }
  0xd6   : > { %v471_v32 = vpop.permute.xlu0 %470 }
 0x135   : > { %v1457_v30 = vpop.f32.mrb[0].mxu0 }
 0x136   : > { %v461_v33 = vadd.f32 %v1457_v30, %v1383_v28  ;;  %v455_v34 = vpop.f32.mrb[1].mxu0 }
 0x137   : > { %v456_v35 = vadd.f32 %v1383_v28, %v455_v34 }
 0x138   : > { %v476_v37 = vsel %vm474_vm1, %v461_v33, %v471_v32  ;;  %v803_v32 = vld [vmem:[#allocation6 + $0x40] sm:$0xff]  ;;  %v804_v33 = vld [vmem:[#allocation6 + $0x48] sm:$0xff] }
 0x139   : > { %v475_v38 = vsel %vm474_vm1, %v456_v35, %v469_v23  ;;  %v526_v40 = vcombine.high %v476_v37, %v1743_v39  ;;  %v533_v41 = vrot.slane %v476_v37, %v483_v31  ;;  %v1553_v37 = vpack.c.bf16 %v804_v33, %v803_v32 }
 0x13a   : > { %v477_v42 = vcombine.high %v475_v38, %v1743_v39  ;;  %v484_v43 = vrot.slane %v475_v38, %v483_v31  ;;  %v805_v38 = vld [vmem:[#allocation6 + $0x50] sm:$0xff] }
 0x13b   : > { %v540_v44 = vrot.slane %v526_v40, %v483_v31  ;;  %v541_v45 = vcombine.high %v533_v41, %v1743_v39  ;;  %v548_v46 = vrot.slane %v533_v41, %v498_v36  ;;  %v576_v40 = vld [vmem:[#allocation2 + $0x8] sm:$0xff] }
 0x13c   : > { %v491_v47 = vrot.slane %v477_v42, %v483_v31  ;;  %v492_v48 = vcombine.high %v484_v43, %v1743_v39  ;;  %v499_v49 = vrot.slane %v484_v43, %v498_v36  ;;  %v575_v31 = vld [vmem:[#allocation2] sm:$0xff]  ;;  %v807_v42 = vld [vmem:[#allocation6 + $0x60] sm:$0xff]  ;;  %v808_v43 = vld [vmem:[#allocation6 + $0x68] sm:$0xff] }
 0x13d   : > { %v555_v50 = vrot.slane %v541_v45, %v498_v36  ;;  %v556_v51 = vcombine.high %v540_v44, %v1743_v39  ;;  %v563_v52 = vrot.slane %v540_v44, %v498_v36  ;;  %v571_v53 = vcombine.high %v548_v46, %v1743_v39  ;;  %1481 = vmatprep.mubr.msk.f32.mxu0 %vm718_vm10, %v575_v31  ;;  %v809_v45 = vld [vmem:[#allocation6 + $0x70] sm:$0xff] }
 0x13e   : > { %v506_v54 = vrot.slane %v492_v48, %v498_v36  ;;  %v514_v55 = vrot.slane %v491_v47, %v498_v36  ;;  %v522_v56 = vcombine.high %v499_v49, %v1743_v39  ;;  %v507_v57 = vcombine.high %v491_v47, %v1743_v39 }
 0x13f   : > { %v570_v58 = vrot.slane %v556_v51, %v498_v36  ;;  %v572_v59 = vcombine.high %v555_v50, %v1743_v39  ;;  %v573_v60 = vcombine.high %v563_v52, %v1743_v39  ;;  %v622_v61 = vrot.slane %v571_v53, 7 }
 0x140   : > { %v523_v62 = vcombine.high %v506_v54, %v1743_v39  ;;  %v601_v63 = vrot.slane %v522_v56, 7  ;;  %v604_v0 = vrot.slane %v506_v54, 6  ;;  %v624_v1 = vrot.slane %v555_v50, 6  ;;  %v969_v54 = vld [vmem:[%s1990_s6] sm:$0xff]  ;;  %v971_v56 = vld [vmem:[%s1990_s6 + $0x10] sm:$0xff] }
 0x141   : > { %v623_v2 = vsel %vm602_vm2, %v622_v61, %v548_v46  ;;  %v626_v3 = vrot.slane %v572_v59, 5  ;;  %v628_v4 = vrot.slane %v563_v52, 4  ;;  %v521_v8 = vrot.slane %v507_v57, %v498_v36  ;;  %v810_v46 = vld [vmem:[#allocation6 + $0x78] sm:$0xff]  ;;  %v974_v61 = vld [vmem:[%s1990_s6 + $0x28] sm:$0xff] }
 0x142   : > { %v603_v5 = vsel %vm602_vm2, %v601_v63, %v499_v49  ;;  %v607_v6 = vrot.slane %v523_v62, 5  ;;  %v625_v7 = vsel %vm605_vm3, %v624_v1, %v623_v2  ;;  %v630_v9 = vrot.slane %v573_v60, 3  ;;  %v973_v60 = vld [vmem:[%s1990_s6 + $0x20] sm:$0xff]  ;;  %v975_v2 = vld [vmem:[%s1990_s6 + $0x30] sm:$0xff] }
 0x143   : > { %v524_v10 = vcombine.high %v514_v55, %v1743_v39  ;;  %v606_v11 = vsel %vm605_vm3, %v604_v0, %v603_v5  ;;  %v610_v12 = vrot.slane %v514_v55, 4  ;;  %v525_v13 = vcombine.high %v521_v8, %v1743_v39  ;;  %v970_v55 = vld [vmem:[%s1990_s6 + $0x8] sm:$0xff] }
 0x144   : > { %v609_v14 = vsel %vm608_vm4, %v607_v6, %v606_v11  ;;  %v574_v15 = vcombine.high %v570_v58, %v1743_v39  ;;  %v627_v16 = vsel %vm608_vm4, %v626_v3, %v625_v7  ;;  %v632_v20 = vrot.slane %v570_v58, 2  ;;  %v806_v39 = vld [vmem:[#allocation6 + $0x58] sm:$0xff]  ;;  %v972_v58 = vld [vmem:[%s1990_s6 + $0x18] sm:$0xff] }
 0x145   : > { %v612_v17 = vsel %vm611_vm5, %v610_v12, %v609_v14  ;;  %v613_v18 = vrot.slane %v524_v10, 3  ;;  %v629_v19 = vsel %vm611_vm5, %v628_v4, %v627_v16  ;;  %v616_v21 = vrot.slane %v521_v8, 2  ;;  %v976_v3 = vld [vmem:[%s1990_s6 + $0x38] sm:$0xff]  ;;  %v1394_v14 = vld [vmem:[%s1991_s7] ss:$0 sm:$0xff] }
 0x146   : > { %v631_v22 = vsel %vm614_vm6, %v630_v9, %v629_v19  ;;  %v619_v24 = vrot.slane %v525_v13, 1  ;;  %v634_v28 = vrot.slane %v574_v15, 1  ;;  %v1557_v41 = vpack.c.bf16 %v806_v39, %v805_v38 }
 0x147   : > { %v615_v23 = vsel %vm614_vm6, %v613_v18, %v612_v17  ;;  %v633_v25 = vsel %vm617_vm7, %v632_v20, %v631_v22  ;;  %v1561_v44 = vpack.c.bf16 %v808_v43, %v807_v42  ;;  %v1565_v47 = vpack.c.bf16 %v810_v46, %v809_v45 }
 0x148   : > { %v618_v26 = vsel %vm617_vm7, %v616_v21, %v615_v23  ;;  %v635_v30 = vsel %vm620_vm8, %v634_v28, %v633_v25  ;;  %v1573_v57 = vpack.c.bf16 %v970_v55, %v969_v54  ;;  %v1577_v59 = vpack.c.bf16 %v972_v58, %v971_v56 }
 0x149   : > { %v621_v29 = vsel %vm620_vm8, %v619_v24, %v618_v26  ;;  %v1581_v62 = vpack.c.bf16 %v974_v61, %v973_v60  ;;  %v1585_v4 = vpack.c.bf16 %v976_v3, %v975_v2  ;;  %v1744_v11 = vmov 1966171168  }
 0x14a   : > { %1474 = vmatprep.mubr.msk.f32.mxu1 %vm636_vm9, %v621_v29  ;;  %1574 = vmatprep.subr.bf16.mxu1 %v1573_v57  ;;  %v1069_v12 = vunpack.c.l.s4 %v1744_v11 }
 0x14b   : > { %1475 = vmatmul.mubr.msk.f32.vlgmr.msra.gmra.mrb[0].mxu1 %vm636_vm9, %v635_v30 }
 0x14c   : > { %1576 = vmatpush3.bf16.msra.mxu1 %v1573_v57  ;;  %v1070_v13 = vunpack.c.0.s8 %v1069_v12 }
 0x14d   : > { %1578 = vmatprep.subr.bf16.mxu1 %v1577_v59 }
 0x14e   : > { %v1073_v15 = vsub.s32 %v1070_v13, %v1920_v27 }
 0x150   : > { %1580 = vmatpush3.bf16.msra.mxu1 %v1577_v59 }
 0x151   : > { %1582 = vmatprep.subr.bf16.mxu1 %v1581_v62 }
 0x154   : > { %1584 = vmatpush3.bf16.msra.mxu1 %v1581_v62 }
 0x155   : > { %1586 = vmatprep.subr.bf16.mxu1 %v1585_v4 }
 0x158   : > { %1588 = vmatpush3.bf16.msra.mxu1 %v1585_v4 }
 0x21e   : > { %v1476_v34 = vpop.f32.mrb[0].mxu1 }
 0x21f   : > { %v707_v35 = vpop.f32.mrb[1].mxu1 }
 0x220   : > { %v1549_v36 = vpack.c.bf16 %v1476_v34, %v707_v35 }
 0x222   : > { %1550 = vmatprep.subr.bf16.mxu0 %v1549_v36 }
 0x223   : > { %1552 = vmatpush3.bf16.msra.mxu0 %v1549_v36 }
 0x224   : > { %1554 = vmatprep.subr.bf16.mxu0 %v1553_v37 }
 0x226   : > { %1482 = vmatmul.mubr.msk.f32.vlgmr.msra.gmra.mrb[2].mxu0 %vm718_vm10, %v576_v40 }
 0x227   : > { %1556 = vmatpush3.bf16.msra.mxu0 %v1553_v37 }
 0x228   : > { %1558 = vmatprep.subr.bf16.mxu0 %v1557_v41 }
 0x22b   : > { %1560 = vmatpush3.bf16.msra.mxu0 %v1557_v41 }
 0x22c   : > { %1562 = vmatprep.subr.bf16.mxu0 %v1561_v44 }
 0x22f   : > { %1564 = vmatpush3.bf16.msra.mxu0 %v1561_v44 }
 0x230   : > { %1566 = vmatprep.subr.bf16.mxu0 %v1565_v47 }
 0x233   : > { %1568 = vmatpush3.bf16.msra.mxu0 %v1565_v47 }
 0x2f9   : > { %v1483_v48 = vpop.f32.mrb[2].mxu0 }
 0x2fa   : > { %v797_v49 = vadd.f32 %v1483_v48, %v635_v30  ;;  %v791_v50 = vpop.f32.mrb[3].mxu0 }
 0x2fb   : > { %v792_v51 = vadd.f32 %v791_v50, %v621_v29 }
 0x2fc   : > { %v801_v53 = vmax.f32 %v797_v49, 0.0 }
 0x2fd   : > { %v800_v52 = vmax.f32 %v792_v51, 0.0 }
 0x2ff   : > { %1500 = vmatprep.mubr.msk.f32.mxu0 %vm636_vm9, %v800_v52 }
 0x300   : > { %1501 = vmatmul.mubr.msk.f32.vlgmr.msra.gmra.mrb[4].mxu0 %vm636_vm9, %v801_v53 }
 0x301   : > { %1507 = vmatprep.mubr.msk.f32.mxu0 %vm718_vm10, %v575_v31 }
 0x3d3   : > { %v1502_v63 = vpop.f32.mrb[4].mxu0 }
 0x3d4   : > { %v883_v0 = vpop.f32.mrb[5].mxu0 }
 0x3d5   : > { %v1569_v1 = vpack.c.bf16 %v1502_v63, %v883_v0 }
 0x3d7   : > { %1570 = vmatprep.subr.bf16.mxu0 %v1569_v1 }
 0x3d8   : > { %1572 = vmatpush3.bf16.msra.mxu0 %v1569_v1 }
 0x3db   : > { %1508 = vmatmul.mubr.msk.f32.vlgmr.msra.gmra.mrb[6].mxu0 %vm718_vm10, %v576_v40 }
 0x4ae   : > { %v1509_v5 = vpop.f32.mrb[6].mxu0 }
 0x4af   : > { %v964_v6 = vadd.f32 %v1509_v5, %v801_v53  ;;  %v958_v7 = vpop.f32.mrb[7].mxu0 }
 0x4b0   : > { %v959_v8 = vadd.f32 %v958_v7, %v800_v52 }
 0x4b1   : > { %v968_v10 = vmax.f32 %v964_v6, 0.0 }
 0x4b2   : > { %v967_v9 = vmax.f32 %v959_v8, 0.0 }
 0x4b4   : > { %1526 = vmatprep.mubr.msk.f32.mxu1 %vm636_vm9, %v967_v9 }
 0x4b5   : > { %1527 = vmatmul.mubr.msk.f32.vlgmr.msra.gmra.mrb[2].mxu1 %vm636_vm9, %v968_v10 }
 0x588   : > { %v1528_v16 = vpop.f32.mrb[2].mxu1 }
 0x589   : > { %v1062_v17 = vadd.f32 %v1528_v16, %v1394_v14  ;;  %v1056_v18 = vpop.f32.mrb[3].mxu1 }
 0x58a   : > { %v1057_v19 = vadd.f32 %v1394_v14, %v1056_v18 }
 0x58b   : > { %v1116_v20 = vcombine.high %v1062_v17, %v1062_v17  ;;  %v1123_v21 = vrot.slane %v1062_v17, %v1073_v15 }
 0x58c   : > { %v1067_v22 = vcombine.high %v1057_v19, %v1057_v19  ;;  %v1074_v23 = vrot.slane %v1057_v19, %v1073_v15 }
 0x58d   : > { %v1130_v24 = vrot.slane %v1116_v20, %v1073_v15  ;;  %v1131_v25 = vcombine.high %v1123_v21, %v1123_v21  ;;  %v1139_v26 = vrot.slane %v1123_v21, %v1073_v15 }
 0x58e   : > { %v1081_v28 = vrot.slane %v1067_v22, %v1073_v15  ;;  %v1082_v29 = vcombine.high %v1074_v23, %v1074_v23  ;;  %v1090_v30 = vrot.slane %v1074_v23, %v1073_v15 }
 0x58f   : > { %v1132_v31 = vcombine.high %v1130_v24, %v1130_v24  ;;  %v1146_v32 = vrot.slane %v1130_v24, %v1073_v15  ;;  %v1153_v33 = vrot.slane %v1131_v25, %v1073_v15 }
 0x590   : > { %v1083_v34 = vcombine.high %v1081_v28, %v1081_v28  ;;  %v1097_v35 = vrot.slane %v1081_v28, %v1073_v15  ;;  %v1104_v27 = vrot.slane %v1082_v29, %v1073_v15 }
 0x591   : > { %v1160_v36 = vrot.slane %v1132_v31, %v1073_v15  ;;  %v1214_v37 = vcombine.low %v1139_v26, %v1153_v33  ;;  %v1399_v38 = vcombine.high %v1139_v26, %v1153_v33 }
 0x592   : > { %v1111_v39 = vrot.slane %v1083_v34, %v1073_v15  ;;  %v1165_v40 = vcombine.low %v1090_v30, %v1104_v27  ;;  %v1397_v41 = vcombine.high %v1090_v30, %v1104_v27 }
 0x593   : > { %v1216_v42 = vcombine.low %v1146_v32, %v1160_v36  ;;  %v1400_v43 = vcombine.high %v1146_v32, %v1160_v36  ;;  %v1224_v44 = vrot.slane %v1214_v37, %v1073_v15  ;;  %v1231_v45 = vrot.slane %v1399_v38, %v1073_v15 }
 0x594   : > { %v1167_v46 = vcombine.low %v1097_v35, %v1111_v39  ;;  %v1398_v47 = vcombine.high %v1097_v35, %v1111_v39  ;;  %v1175_v48 = vrot.slane %v1165_v40, %v1073_v15  ;;  %v1182_v49 = vrot.slane %v1397_v41, %v1073_v15 }
 0x595   : > { %v1238_v50 = vrot.slane %v1216_v42, %v1073_v15  ;;  %v1245_v51 = vrot.slane %v1400_v43, %v1073_v15  ;;  %v1246_v52 = vcombine.low %v1224_v44, %v1231_v45 }
 0x596   : > { %v1189_v53 = vrot.slane %v1167_v46, %v1073_v15  ;;  %v1196_v54 = vrot.slane %v1398_v47, %v1073_v15  ;;  %v1197_v55 = vcombine.low %v1175_v48, %v1182_v49 }
 0x597   : > { %v1247_v56 = vcombine.low %v1238_v50, %v1245_v51  ;;  %v1254_v57 = vrot.slane %v1246_v52, %v1073_v15 }
 0x598   : > { %v1198_v58 = vcombine.low %v1189_v53, %v1196_v54  ;;  %v1205_v59 = vrot.slane %v1197_v55, %v1073_v15 }
 0x599   : > { %v1261_v60 = vrot.slane %v1247_v56, %v1073_v15 }
 0x59a   : > { %v1212_v61 = vrot.slane %v1198_v58, %v1073_v15 }
 0x59b   : > { %v1262_v62 = vcombine.low %v1254_v57, %v1261_v60 }
 0x59c   : > { %v1213_v63 = vcombine.low %v1205_v59, %v1212_v61 }
 0x59d   : > { %1267 = vst.msk [vmem:[%s369_s22 + $0x8] sm:$0xff] %vm1265_vm11, %v1262_v62 }
 0x59e   : > { %1266 = vst.msk [vmem:[%s369_s22] sm:$0xff] %vm1265_vm11, %v1213_v63 }
 0x59f PF: > { %s20_s27 = sadd.s32 1, %s1733_s27  }
 0x5a0   : > { %p17_p5 = scmp.ge.s32.totalorder %s20_s27, 4  }
 0x5a2   :  { %19 = sbr.rel (!%p17_p5) target bundleno = 2 (0x2), region = 99 }
 0x5a9   :  { %1289 = vsyncpa [#allocation3], 1 }
 0x5aa   :  { %1291 = vsyncpa [#allocation3 + $0x1], 1 }
 0x5ab   :  { %1292 = vsyncpa [#allocation5], 1 }

</bundles_post_ra>
